<compile_context>
chip_gen: v5e
topology: v5e:2x2
jax: 0.10.0
libtpu: 0.0.40
codegen_flags: <defaults>
</compile_context>

<pallas_src>
import jax
import jax.numpy as jnp
from jax.experimental import pallas as pl
from jax.experimental.pallas import tpu as pltpu

HIDDEN = 64          # hidden size (PyTorch)
OUT_FEATURES = 3     # real output features
OUT_PAD = 128        # padded output lanes for an unmasked (8,128) store
SUBLANES = 8         # batch padded to a multiple of 8 sublanes


def lstm_last_kernel(x_ref, w_x_ref, b_x_ref, w_hh_ref, w_out_ref, b_out_ref,
                     out_ref):
    # x_ref:     (T, Bp, 1)        raw inputs (input_size = 1)
    # w_x_ref:   (1, 4*H)          W_ih row, gate order (i,f,o,g), sigmoid gates *0.5
    # b_x_ref:   (1, 4*H)          b_ih + b_hh, same order/scaling
    # w_hh_ref:  (H, 4*H)          W_hh^T, same order/scaling
    # w_out_ref: (H, OUT_PAD)      final linear weights^T, zero-padded lanes
    # b_out_ref: (1, OUT_PAD)
    # out_ref:   (Bp, OUT_PAD)
    T, Bp, _ = x_ref.shape
    H = HIDDEN
    GW = 4 * H

    # Hoist the (1, GW) -> (Bp, GW) broadcasts out of the unrolled loop
    # (JAX does not CSE broadcast_in_dim).
    w_x = jnp.broadcast_to(w_x_ref[...], (Bp, GW))
    b_x = jnp.broadcast_to(b_x_ref[...], (Bp, GW))

    h = jnp.zeros((Bp, H), jnp.float32)
    c = jnp.zeros((Bp, H), jnp.float32)

    # T is small & static -> full unroll with static offsets; the whole
    # recurrence stays visible to the scheduler.
    for t in range(T):
        # Input projection: off the serial h-chain, overlaps with step t-1.
        zx = x_ref[t] * w_x + b_x                                    # (Bp, GW)
        # Recurrent matmul; ref indexed at the dot (no 64 KiB weight value
        # pinned in vregs across the unrolled loop).
        z = zx + jnp.dot(h, w_hh_ref[...],
                         preferred_element_type=jnp.float32)         # (Bp, GW)
        a = jnp.tanh(z)          # one EUP stream over all 4 gates
        sg = 0.5 * a + 0.5       # sigmoid(z) = 0.5*tanh(z/2)+0.5 (weights pre-scaled)
        i = sg[:, 0 * H:1 * H]
        f = sg[:, 1 * H:2 * H]
        o = sg[:, 2 * H:3 * H]
        g = a[:, 3 * H:4 * H]    # true tanh gate (columns not pre-scaled)
        c = f * c + i * g
        h = o * jnp.tanh(c)

    out_ref[...] = (jnp.dot(h, w_out_ref[...],
                            preferred_element_type=jnp.float32)
                    + b_out_ref[...])


def _prep_gate_cols(a):
    """Last-axis gate columns: PyTorch order (i,f,g,o) -> (i,f,o,g), with the
    three sigmoid gates pre-scaled by 0.5 for the tanh-based sigmoid."""
    H = HIDDEN
    i_ = a[..., 0 * H:1 * H]
    f_ = a[..., 1 * H:2 * H]
    g_ = a[..., 2 * H:3 * H]
    o_ = a[..., 3 * H:4 * H]
    return jnp.concatenate([0.5 * i_, 0.5 * f_, 0.5 * o_, g_], axis=-1)


@jax.jit
def rnn_forward(x, params):
    """x: (B, T, 1) float32 -> (B, 3) float32 (same as RNN.forward)."""
    w_ih, w_hh, b_ih, b_hh, w_out, b_out = params
    B, T, _ = x.shape
    H = HIDDEN
    GW = 4 * H
    B_pad = ((B + SUBLANES - 1) // SUBLANES) * SUBLANES

    # ---- weight prep (gate reorder + sigmoid pre-scale) ----
    w_ih_row = _prep_gate_cols(jnp.transpose(w_ih).astype(jnp.float32))     # (1, GW)
    b_row = _prep_gate_cols((b_ih + b_hh).astype(jnp.float32)
                            .reshape(1, GW))                                # (1, GW)
    w_hh_t = _prep_gate_cols(jnp.transpose(w_hh).astype(jnp.float32))       # (H, GW)
    w_out_t = jnp.pad(jnp.transpose(w_out).astype(jnp.float32),
                      ((0, 0), (0, OUT_PAD - OUT_FEATURES)))                # (H, OUT_PAD)
    b_out_row = jnp.pad(b_out.astype(jnp.float32),
                        (0, OUT_PAD - OUT_FEATURES)).reshape(1, OUT_PAD)    # (1, OUT_PAD)

    # ---- inputs: pad batch to sublanes, time-major for the kernel ----
    x_pad = jnp.pad(x.astype(jnp.float32), ((0, B_pad - B), (0, 0), (0, 0)))
    x_tm = jnp.transpose(x_pad, (1, 0, 2))                                  # (T, Bp, 1)

    grid = (B_pad // SUBLANES,)
    out_pad = pl.pallas_call(
        lstm_last_kernel,
        out_shape=jax.ShapeDtypeStruct((B_pad, OUT_PAD), jnp.float32),
        grid=grid,
        in_specs=[
            pl.BlockSpec((T, SUBLANES, 1), lambda b: (0, b, 0)),
            pl.BlockSpec((1, GW), lambda b: (0, 0)),
            pl.BlockSpec((1, GW), lambda b: (0, 0)),
            pl.BlockSpec((H, GW), lambda b: (0, 0)),
            pl.BlockSpec((H, OUT_PAD), lambda b: (0, 0)),
            pl.BlockSpec((1, OUT_PAD), lambda b: (0, 0)),
        ],
        out_specs=pl.BlockSpec((SUBLANES, OUT_PAD), lambda b: (b, 0)),
        compiler_params=pltpu.CompilerParams(
            dimension_semantics=("parallel",)),
    )(x_tm, w_ih_row, b_row, w_hh_t, w_out_t, b_out_row)

    return out_pad[:B, :OUT_FEATURES]


def rnn_forward_ref(x, params):
    """Pure-JAX reference of the PyTorch forward, for a correctness check."""
    w_ih, w_hh, b_ih, b_hh, w_out, b_out = params
    B, T, _ = x.shape
    H = HIDDEN
    h = jnp.zeros((B, H), jnp.float32)
    c = jnp.zeros((B, H), jnp.float32)
    for t in range(T):
        x_t = x[:, t, :]                               # (B, 1)
        gates = x_t @ w_ih.T + h @ w_hh.T + b_ih + b_hh
        i = jax.nn.sigmoid(gates[:, 0 * H:1 * H])
        f = jax.nn.sigmoid(gates[:, 1 * H:2 * H])
        g = jnp.tanh(gates[:, 2 * H:3 * H])
        o = jax.nn.sigmoid(gates[:, 3 * H:4 * H])
        c = f * c + i * g
        h = o * jnp.tanh(c)
    return h @ w_out.T + b_out


def init_params(key):
    """Deterministic init mimicking PyTorch's U(-1/sqrt(H), 1/sqrt(H))."""
    H = HIDDEN
    bound = 1.0 / (H ** 0.5)
    ks = jax.random.split(key, 6)
    w_ih = jax.random.uniform(ks[0], (4 * H, 1), jnp.float32, -bound, bound)
    w_hh = jax.random.uniform(ks[1], (4 * H, H), jnp.float32, -bound, bound)
    b_ih = jax.random.uniform(ks[2], (4 * H,), jnp.float32, -bound, bound)
    b_hh = jax.random.uniform(ks[3], (4 * H,), jnp.float32, -bound, bound)
    w_out = jax.random.uniform(ks[4], (OUT_FEATURES, H), jnp.float32, -bound, bound)
    b_out = jax.random.uniform(ks[5], (OUT_FEATURES,), jnp.float32, -bound, bound)
    return (w_ih, w_hh, b_ih, b_hh, w_out, b_out)


if __name__ == "__main__":
    key = jax.random.PRNGKey(0)
    k_param, k_x = jax.random.split(key)
    params = init_params(k_param)

    B, T = 2, 8
    x = jax.random.normal(k_x, (B, T, 1), jnp.float32)

    out = jax.block_until_ready(rnn_forward(x, params))
    ref = jax.block_until_ready(rnn_forward_ref(x, params))

    assert out.shape == (B, OUT_FEATURES)
    assert jnp.allclose(out, ref, rtol=1e-3, atol=1e-3), (out, ref)
    print("KERNEL_OK")
</pallas_src>

<mosaic_0001>
module attributes {stable_mosaic.version = 11 : i64} {
  func.func @lstm_last_kernel(%arg0: i32, %arg1: memref<8x8x1xf32, #tpu.memory_space<vmem>>, %arg2: memref<1x256xf32, #tpu.memory_space<vmem>>, %arg3: memref<1x256xf32, #tpu.memory_space<vmem>>, %arg4: memref<64x256xf32, #tpu.memory_space<vmem>>, %arg5: memref<64x128xf32, #tpu.memory_space<vmem>>, %arg6: memref<1x128xf32, #tpu.memory_space<vmem>>, %arg7: memref<8x128xf32, #tpu.memory_space<vmem>>) attributes {dimension_semantics = [#tpu.dimension_semantics<parallel>], iteration_bounds = array<i64: 1>, scalar_prefetch = 0 : i64, scratch_operands = 0 : i64, tpu.core_type = #tpu.core_type<tc>, window_params = [{transform_indices = @transform_0, window_bounds = array<i64: 8, 8, 1>}, {pipeline_mode = #tpu.pipeline_mode<synchronous>, transform_indices = @transform_1, window_bounds = array<i64: 1, 256>}, {pipeline_mode = #tpu.pipeline_mode<synchronous>, transform_indices = @transform_2, window_bounds = array<i64: 1, 256>}, {pipeline_mode = #tpu.pipeline_mode<synchronous>, transform_indices = @transform_3, window_bounds = array<i64: 64, 256>}, {pipeline_mode = #tpu.pipeline_mode<synchronous>, transform_indices = @transform_4, window_bounds = array<i64: 64, 128>}, {pipeline_mode = #tpu.pipeline_mode<synchronous>, transform_indices = @transform_5, window_bounds = array<i64: 1, 128>}, {transform_indices = @transform_6, window_bounds = array<i64: 8, 128>}]} {
    %c0 = arith.constant 0 : index
    %c0_0 = arith.constant 0 : index
    %0 = vector.load %arg2[%c0, %c0_0] : memref<1x256xf32, #tpu.memory_space<vmem>>, vector<1x256xf32>
    %1 = vector.shape_cast %0 : vector<1x256xf32> to vector<1x256xf32>
    %2 = vector.broadcast %1 : vector<1x256xf32> to vector<8x256xf32>
    %c0_1 = arith.constant 0 : index
    %c0_2 = arith.constant 0 : index
    %3 = vector.load %arg3[%c0_1, %c0_2] : memref<1x256xf32, #tpu.memory_space<vmem>>, vector<1x256xf32>
    %4 = vector.shape_cast %3 : vector<1x256xf32> to vector<1x256xf32>
    %5 = vector.broadcast %4 : vector<1x256xf32> to vector<8x256xf32>
    %cst = arith.constant 0.000000e+00 : f32
    %6 = vector.broadcast %cst : f32 to vector<8x64xf32>
    %cst_3 = arith.constant 0.000000e+00 : f32
    %7 = vector.broadcast %cst_3 : f32 to vector<8x64xf32>
    %c0_4 = arith.constant 0 : index
    %c0_5 = arith.constant 0 : index
    %c0_6 = arith.constant 0 : index
    %8 = vector.load %arg1[%c0_4, %c0_5, %c0_6] : memref<8x8x1xf32, #tpu.memory_space<vmem>>, vector<1x8x1xf32>
    %9 = vector.shape_cast %8 : vector<1x8x1xf32> to vector<8x1xf32>
    %10 = vector.broadcast %9 : vector<8x1xf32> to vector<8x256xf32>
    %11 = arith.mulf %10, %2 : vector<8x256xf32>
    %12 = arith.addf %11, %5 : vector<8x256xf32>
    %c0_7 = arith.constant 0 : index
    %c0_8 = arith.constant 0 : index
    %13 = vector.load %arg4[%c0_7, %c0_8] : memref<64x256xf32, #tpu.memory_space<vmem>>, vector<64x256xf32>
    %cst_9 = arith.constant dense<0.000000e+00> : vector<8x256xf32>
    %14 = tpu.matmul %6, %13, %cst_9 {dimension_numbers = #tpu.dot_dimension_numbers<[1], [0], [0], [1], [0, 0, 1, 1], [], []>} : vector<8x64xf32>, vector<64x256xf32>, vector<8x256xf32> -> vector<8x256xf32>
    %15 = arith.addf %12, %14 : vector<8x256xf32>
    %16 = math.tanh %15 : vector<8x256xf32>
    %cst_10 = arith.constant 5.000000e-01 : f32
    %17 = vector.broadcast %cst_10 : f32 to vector<8x256xf32>
    %18 = arith.mulf %17, %16 : vector<8x256xf32>
    %cst_11 = arith.constant 5.000000e-01 : f32
    %19 = vector.broadcast %cst_11 : f32 to vector<8x256xf32>
    %20 = arith.addf %18, %19 : vector<8x256xf32>
    %21 = vector.extract_strided_slice %20 {offsets = [0, 0], sizes = [8, 64], strides = [1, 1]} : vector<8x256xf32> to vector<8x64xf32>
    %22 = vector.extract_strided_slice %20 {offsets = [0, 64], sizes = [8, 64], strides = [1, 1]} : vector<8x256xf32> to vector<8x64xf32>
    %23 = vector.extract_strided_slice %20 {offsets = [0, 128], sizes = [8, 64], strides = [1, 1]} : vector<8x256xf32> to vector<8x64xf32>
    %24 = vector.extract_strided_slice %16 {offsets = [0, 192], sizes = [8, 64], strides = [1, 1]} : vector<8x256xf32> to vector<8x64xf32>
    %25 = arith.mulf %22, %7 : vector<8x64xf32>
    %26 = arith.mulf %21, %24 : vector<8x64xf32>
    %27 = arith.addf %25, %26 : vector<8x64xf32>
    %28 = math.tanh %27 : vector<8x64xf32>
    %29 = arith.mulf %23, %28 : vector<8x64xf32>
    %c1 = arith.constant 1 : index
    %c0_12 = arith.constant 0 : index
    %c0_13 = arith.constant 0 : index
    %30 = vector.load %arg1[%c1, %c0_12, %c0_13] : memref<8x8x1xf32, #tpu.memory_space<vmem>>, vector<1x8x1xf32>
    %31 = vector.shape_cast %30 : vector<1x8x1xf32> to vector<8x1xf32>
    %32 = vector.broadcast %31 : vector<8x1xf32> to vector<8x256xf32>
    %33 = arith.mulf %32, %2 : vector<8x256xf32>
    %34 = arith.addf %33, %5 : vector<8x256xf32>
    %c0_14 = arith.constant 0 : index
    %c0_15 = arith.constant 0 : index
    %35 = vector.load %arg4[%c0_14, %c0_15] : memref<64x256xf32, #tpu.memory_space<vmem>>, vector<64x256xf32>
    %cst_16 = arith.constant dense<0.000000e+00> : vector<8x256xf32>
    %36 = tpu.matmul %29, %35, %cst_16 {dimension_numbers = #tpu.dot_dimension_numbers<[1], [0], [0], [1], [0, 0, 1, 1], [], []>} : vector<8x64xf32>, vector<64x256xf32>, vector<8x256xf32> -> vector<8x256xf32>
    %37 = arith.addf %34, %36 : vector<8x256xf32>
    %38 = math.tanh %37 : vector<8x256xf32>
    %cst_17 = arith.constant 5.000000e-01 : f32
    %39 = vector.broadcast %cst_17 : f32 to vector<8x256xf32>
    %40 = arith.mulf %39, %38 : vector<8x256xf32>
    %cst_18 = arith.constant 5.000000e-01 : f32
    %41 = vector.broadcast %cst_18 : f32 to vector<8x256xf32>
    %42 = arith.addf %40, %41 : vector<8x256xf32>
    %43 = vector.extract_strided_slice %42 {offsets = [0, 0], sizes = [8, 64], strides = [1, 1]} : vector<8x256xf32> to vector<8x64xf32>
    %44 = vector.extract_strided_slice %42 {offsets = [0, 64], sizes = [8, 64], strides = [1, 1]} : vector<8x256xf32> to vector<8x64xf32>
    %45 = vector.extract_strided_slice %42 {offsets = [0, 128], sizes = [8, 64], strides = [1, 1]} : vector<8x256xf32> to vector<8x64xf32>
    %46 = vector.extract_strided_slice %38 {offsets = [0, 192], sizes = [8, 64], strides = [1, 1]} : vector<8x256xf32> to vector<8x64xf32>
    %47 = arith.mulf %44, %27 : vector<8x64xf32>
    %48 = arith.mulf %43, %46 : vector<8x64xf32>
    %49 = arith.addf %47, %48 : vector<8x64xf32>
    %50 = math.tanh %49 : vector<8x64xf32>
    %51 = arith.mulf %45, %50 : vector<8x64xf32>
    %c2 = arith.constant 2 : index
    %c0_19 = arith.constant 0 : index
    %c0_20 = arith.constant 0 : index
    %52 = vector.load %arg1[%c2, %c0_19, %c0_20] : memref<8x8x1xf32, #tpu.memory_space<vmem>>, vector<1x8x1xf32>
    %53 = vector.shape_cast %52 : vector<1x8x1xf32> to vector<8x1xf32>
    %54 = vector.broadcast %53 : vector<8x1xf32> to vector<8x256xf32>
    %55 = arith.mulf %54, %2 : vector<8x256xf32>
    %56 = arith.addf %55, %5 : vector<8x256xf32>
    %c0_21 = arith.constant 0 : index
    %c0_22 = arith.constant 0 : index
    %57 = vector.load %arg4[%c0_21, %c0_22] : memref<64x256xf32, #tpu.memory_space<vmem>>, vector<64x256xf32>
    %cst_23 = arith.constant dense<0.000000e+00> : vector<8x256xf32>
    %58 = tpu.matmul %51, %57, %cst_23 {dimension_numbers = #tpu.dot_dimension_numbers<[1], [0], [0], [1], [0, 0, 1, 1], [], []>} : vector<8x64xf32>, vector<64x256xf32>, vector<8x256xf32> -> vector<8x256xf32>
    %59 = arith.addf %56, %58 : vector<8x256xf32>
    %60 = math.tanh %59 : vector<8x256xf32>
    %cst_24 = arith.constant 5.000000e-01 : f32
    %61 = vector.broadcast %cst_24 : f32 to vector<8x256xf32>
    %62 = arith.mulf %61, %60 : vector<8x256xf32>
    %cst_25 = arith.constant 5.000000e-01 : f32
    %63 = vector.broadcast %cst_25 : f32 to vector<8x256xf32>
    %64 = arith.addf %62, %63 : vector<8x256xf32>
    %65 = vector.extract_strided_slice %64 {offsets = [0, 0], sizes = [8, 64], strides = [1, 1]} : vector<8x256xf32> to vector<8x64xf32>
    %66 = vector.extract_strided_slice %64 {offsets = [0, 64], sizes = [8, 64], strides = [1, 1]} : vector<8x256xf32> to vector<8x64xf32>
    %67 = vector.extract_strided_slice %64 {offsets = [0, 128], sizes = [8, 64], strides = [1, 1]} : vector<8x256xf32> to vector<8x64xf32>
    %68 = vector.extract_strided_slice %60 {offsets = [0, 192], sizes = [8, 64], strides = [1, 1]} : vector<8x256xf32> to vector<8x64xf32>
    %69 = arith.mulf %66, %49 : vector<8x64xf32>
    %70 = arith.mulf %65, %68 : vector<8x64xf32>
    %71 = arith.addf %69, %70 : vector<8x64xf32>
    %72 = math.tanh %71 : vector<8x64xf32>
    %73 = arith.mulf %67, %72 : vector<8x64xf32>
    %c3 = arith.constant 3 : index
    %c0_26 = arith.constant 0 : index
    %c0_27 = arith.constant 0 : index
    %74 = vector.load %arg1[%c3, %c0_26, %c0_27] : memref<8x8x1xf32, #tpu.memory_space<vmem>>, vector<1x8x1xf32>
    %75 = vector.shape_cast %74 : vector<1x8x1xf32> to vector<8x1xf32>
    %76 = vector.broadcast %75 : vector<8x1xf32> to vector<8x256xf32>
    %77 = arith.mulf %76, %2 : vector<8x256xf32>
    %78 = arith.addf %77, %5 : vector<8x256xf32>
    %c0_28 = arith.constant 0 : index
    %c0_29 = arith.constant 0 : index
    %79 = vector.load %arg4[%c0_28, %c0_29] : memref<64x256xf32, #tpu.memory_space<vmem>>, vector<64x256xf32>
    %cst_30 = arith.constant dense<0.000000e+00> : vector<8x256xf32>
    %80 = tpu.matmul %73, %79, %cst_30 {dimension_numbers = #tpu.dot_dimension_numbers<[1], [0], [0], [1], [0, 0, 1, 1], [], []>} : vector<8x64xf32>, vector<64x256xf32>, vector<8x256xf32> -> vector<8x256xf32>
    %81 = arith.addf %78, %80 : vector<8x256xf32>
    %82 = math.tanh %81 : vector<8x256xf32>
    %cst_31 = arith.constant 5.000000e-01 : f32
    %83 = vector.broadcast %cst_31 : f32 to vector<8x256xf32>
    %84 = arith.mulf %83, %82 : vector<8x256xf32>
    %cst_32 = arith.constant 5.000000e-01 : f32
    %85 = vector.broadcast %cst_32 : f32 to vector<8x256xf32>
    %86 = arith.addf %84, %85 : vector<8x256xf32>
    %87 = vector.extract_strided_slice %86 {offsets = [0, 0], sizes = [8, 64], strides = [1, 1]} : vector<8x256xf32> to vector<8x64xf32>
    %88 = vector.extract_strided_slice %86 {offsets = [0, 64], sizes = [8, 64], strides = [1, 1]} : vector<8x256xf32> to vector<8x64xf32>
    %89 = vector.extract_strided_slice %86 {offsets = [0, 128], sizes = [8, 64], strides = [1, 1]} : vector<8x256xf32> to vector<8x64xf32>
    %90 = vector.extract_strided_slice %82 {offsets = [0, 192], sizes = [8, 64], strides = [1, 1]} : vector<8x256xf32> to vector<8x64xf32>
    %91 = arith.mulf %88, %71 : vector<8x64xf32>
    %92 = arith.mulf %87, %90 : vector<8x64xf32>
    %93 = arith.addf %91, %92 : vector<8x64xf32>
    %94 = math.tanh %93 : vector<8x64xf32>
    %95 = arith.mulf %89, %94 : vector<8x64xf32>
    %c4 = arith.constant 4 : index
    %c0_33 = arith.constant 0 : index
    %c0_34 = arith.constant 0 : index
    %96 = vector.load %arg1[%c4, %c0_33, %c0_34] : memref<8x8x1xf32, #tpu.memory_space<vmem>>, vector<1x8x1xf32>
    %97 = vector.shape_cast %96 : vector<1x8x1xf32> to vector<8x1xf32>
    %98 = vector.broadcast %97 : vector<8x1xf32> to vector<8x256xf32>
    %99 = arith.mulf %98, %2 : vector<8x256xf32>
    %100 = arith.addf %99, %5 : vector<8x256xf32>
    %c0_35 = arith.constant 0 : index
    %c0_36 = arith.constant 0 : index
    %101 = vector.load %arg4[%c0_35, %c0_36] : memref<64x256xf32, #tpu.memory_space<vmem>>, vector<64x256xf32>
    %cst_37 = arith.constant dense<0.000000e+00> : vector<8x256xf32>
    %102 = tpu.matmul %95, %101, %cst_37 {dimension_numbers = #tpu.dot_dimension_numbers<[1], [0], [0], [1], [0, 0, 1, 1], [], []>} : vector<8x64xf32>, vector<64x256xf32>, vector<8x256xf32> -> vector<8x256xf32>
    %103 = arith.addf %100, %102 : vector<8x256xf32>
    %104 = math.tanh %103 : vector<8x256xf32>
    %cst_38 = arith.constant 5.000000e-01 : f32
    %105 = vector.broadcast %cst_38 : f32 to vector<8x256xf32>
    %106 = arith.mulf %105, %104 : vector<8x256xf32>
    %cst_39 = arith.constant 5.000000e-01 : f32
    %107 = vector.broadcast %cst_39 : f32 to vector<8x256xf32>
    %108 = arith.addf %106, %107 : vector<8x256xf32>
    %109 = vector.extract_strided_slice %108 {offsets = [0, 0], sizes = [8, 64], strides = [1, 1]} : vector<8x256xf32> to vector<8x64xf32>
    %110 = vector.extract_strided_slice %108 {offsets = [0, 64], sizes = [8, 64], strides = [1, 1]} : vector<8x256xf32> to vector<8x64xf32>
    %111 = vector.extract_strided_slice %108 {offsets = [0, 128], sizes = [8, 64], strides = [1, 1]} : vector<8x256xf32> to vector<8x64xf32>
    %112 = vector.extract_strided_slice %104 {offsets = [0, 192], sizes = [8, 64], strides = [1, 1]} : vector<8x256xf32> to vector<8x64xf32>
    %113 = arith.mulf %110, %93 : vector<8x64xf32>
    %114 = arith.mulf %109, %112 : vector<8x64xf32>
    %115 = arith.addf %113, %114 : vector<8x64xf32>
    %116 = math.tanh %115 : vector<8x64xf32>
    %117 = arith.mulf %111, %116 : vector<8x64xf32>
    %c5 = arith.constant 5 : index
    %c0_40 = arith.constant 0 : index
    %c0_41 = arith.constant 0 : index
    %118 = vector.load %arg1[%c5, %c0_40, %c0_41] : memref<8x8x1xf32, #tpu.memory_space<vmem>>, vector<1x8x1xf32>
    %119 = vector.shape_cast %118 : vector<1x8x1xf32> to vector<8x1xf32>
    %120 = vector.broadcast %119 : vector<8x1xf32> to vector<8x256xf32>
    %121 = arith.mulf %120, %2 : vector<8x256xf32>
    %122 = arith.addf %121, %5 : vector<8x256xf32>
    %c0_42 = arith.constant 0 : index
    %c0_43 = arith.constant 0 : index
    %123 = vector.load %arg4[%c0_42, %c0_43] : memref<64x256xf32, #tpu.memory_space<vmem>>, vector<64x256xf32>
    %cst_44 = arith.constant dense<0.000000e+00> : vector<8x256xf32>
    %124 = tpu.matmul %117, %123, %cst_44 {dimension_numbers = #tpu.dot_dimension_numbers<[1], [0], [0], [1], [0, 0, 1, 1], [], []>} : vector<8x64xf32>, vector<64x256xf32>, vector<8x256xf32> -> vector<8x256xf32>
    %125 = arith.addf %122, %124 : vector<8x256xf32>
    %126 = math.tanh %125 : vector<8x256xf32>
    %cst_45 = arith.constant 5.000000e-01 : f32
    %127 = vector.broadcast %cst_45 : f32 to vector<8x256xf32>
    %128 = arith.mulf %127, %126 : vector<8x256xf32>
    %cst_46 = arith.constant 5.000000e-01 : f32
    %129 = vector.broadcast %cst_46 : f32 to vector<8x256xf32>
    %130 = arith.addf %128, %129 : vector<8x256xf32>
    %131 = vector.extract_strided_slice %130 {offsets = [0, 0], sizes = [8, 64], strides = [1, 1]} : vector<8x256xf32> to vector<8x64xf32>
    %132 = vector.extract_strided_slice %130 {offsets = [0, 64], sizes = [8, 64], strides = [1, 1]} : vector<8x256xf32> to vector<8x64xf32>
    %133 = vector.extract_strided_slice %130 {offsets = [0, 128], sizes = [8, 64], strides = [1, 1]} : vector<8x256xf32> to vector<8x64xf32>
    %134 = vector.extract_strided_slice %126 {offsets = [0, 192], sizes = [8, 64], strides = [1, 1]} : vector<8x256xf32> to vector<8x64xf32>
    %135 = arith.mulf %132, %115 : vector<8x64xf32>
    %136 = arith.mulf %131, %134 : vector<8x64xf32>
    %137 = arith.addf %135, %136 : vector<8x64xf32>
    %138 = math.tanh %137 : vector<8x64xf32>
    %139 = arith.mulf %133, %138 : vector<8x64xf32>
    %c6 = arith.constant 6 : index
    %c0_47 = arith.constant 0 : index
    %c0_48 = arith.constant 0 : index
    %140 = vector.load %arg1[%c6, %c0_47, %c0_48] : memref<8x8x1xf32, #tpu.memory_space<vmem>>, vector<1x8x1xf32>
    %141 = vector.shape_cast %140 : vector<1x8x1xf32> to vector<8x1xf32>
    %142 = vector.broadcast %141 : vector<8x1xf32> to vector<8x256xf32>
    %143 = arith.mulf %142, %2 : vector<8x256xf32>
    %144 = arith.addf %143, %5 : vector<8x256xf32>
    %c0_49 = arith.constant 0 : index
    %c0_50 = arith.constant 0 : index
    %145 = vector.load %arg4[%c0_49, %c0_50] : memref<64x256xf32, #tpu.memory_space<vmem>>, vector<64x256xf32>
    %cst_51 = arith.constant dense<0.000000e+00> : vector<8x256xf32>
    %146 = tpu.matmul %139, %145, %cst_51 {dimension_numbers = #tpu.dot_dimension_numbers<[1], [0], [0], [1], [0, 0, 1, 1], [], []>} : vector<8x64xf32>, vector<64x256xf32>, vector<8x256xf32> -> vector<8x256xf32>
    %147 = arith.addf %144, %146 : vector<8x256xf32>
    %148 = math.tanh %147 : vector<8x256xf32>
    %cst_52 = arith.constant 5.000000e-01 : f32
    %149 = vector.broadcast %cst_52 : f32 to vector<8x256xf32>
    %150 = arith.mulf %149, %148 : vector<8x256xf32>
    %cst_53 = arith.constant 5.000000e-01 : f32
    %151 = vector.broadcast %cst_53 : f32 to vector<8x256xf32>
    %152 = arith.addf %150, %151 : vector<8x256xf32>
    %153 = vector.extract_strided_slice %152 {offsets = [0, 0], sizes = [8, 64], strides = [1, 1]} : vector<8x256xf32> to vector<8x64xf32>
    %154 = vector.extract_strided_slice %152 {offsets = [0, 64], sizes = [8, 64], strides = [1, 1]} : vector<8x256xf32> to vector<8x64xf32>
    %155 = vector.extract_strided_slice %152 {offsets = [0, 128], sizes = [8, 64], strides = [1, 1]} : vector<8x256xf32> to vector<8x64xf32>
    %156 = vector.extract_strided_slice %148 {offsets = [0, 192], sizes = [8, 64], strides = [1, 1]} : vector<8x256xf32> to vector<8x64xf32>
    %157 = arith.mulf %154, %137 : vector<8x64xf32>
    %158 = arith.mulf %153, %156 : vector<8x64xf32>
    %159 = arith.addf %157, %158 : vector<8x64xf32>
    %160 = math.tanh %159 : vector<8x64xf32>
    %161 = arith.mulf %155, %160 : vector<8x64xf32>
    %c7 = arith.constant 7 : index
    %c0_54 = arith.constant 0 : index
    %c0_55 = arith.constant 0 : index
    %162 = vector.load %arg1[%c7, %c0_54, %c0_55] : memref<8x8x1xf32, #tpu.memory_space<vmem>>, vector<1x8x1xf32>
    %163 = vector.shape_cast %162 : vector<1x8x1xf32> to vector<8x1xf32>
    %164 = vector.broadcast %163 : vector<8x1xf32> to vector<8x256xf32>
    %165 = arith.mulf %164, %2 : vector<8x256xf32>
    %166 = arith.addf %165, %5 : vector<8x256xf32>
    %c0_56 = arith.constant 0 : index
    %c0_57 = arith.constant 0 : index
    %167 = vector.load %arg4[%c0_56, %c0_57] : memref<64x256xf32, #tpu.memory_space<vmem>>, vector<64x256xf32>
    %cst_58 = arith.constant dense<0.000000e+00> : vector<8x256xf32>
    %168 = tpu.matmul %161, %167, %cst_58 {dimension_numbers = #tpu.dot_dimension_numbers<[1], [0], [0], [1], [0, 0, 1, 1], [], []>} : vector<8x64xf32>, vector<64x256xf32>, vector<8x256xf32> -> vector<8x256xf32>
    %169 = arith.addf %166, %168 : vector<8x256xf32>
    %170 = math.tanh %169 : vector<8x256xf32>
    %cst_59 = arith.constant 5.000000e-01 : f32
    %171 = vector.broadcast %cst_59 : f32 to vector<8x256xf32>
    %172 = arith.mulf %171, %170 : vector<8x256xf32>
    %cst_60 = arith.constant 5.000000e-01 : f32
    %173 = vector.broadcast %cst_60 : f32 to vector<8x256xf32>
    %174 = arith.addf %172, %173 : vector<8x256xf32>
    %175 = vector.extract_strided_slice %174 {offsets = [0, 0], sizes = [8, 64], strides = [1, 1]} : vector<8x256xf32> to vector<8x64xf32>
    %176 = vector.extract_strided_slice %174 {offsets = [0, 64], sizes = [8, 64], strides = [1, 1]} : vector<8x256xf32> to vector<8x64xf32>
    %177 = vector.extract_strided_slice %174 {offsets = [0, 128], sizes = [8, 64], strides = [1, 1]} : vector<8x256xf32> to vector<8x64xf32>
    %178 = vector.extract_strided_slice %170 {offsets = [0, 192], sizes = [8, 64], strides = [1, 1]} : vector<8x256xf32> to vector<8x64xf32>
    %179 = arith.mulf %176, %159 : vector<8x64xf32>
    %180 = arith.mulf %175, %178 : vector<8x64xf32>
    %181 = arith.addf %179, %180 : vector<8x64xf32>
    %182 = math.tanh %181 : vector<8x64xf32>
    %183 = arith.mulf %177, %182 : vector<8x64xf32>
    %c0_61 = arith.constant 0 : index
    %c0_62 = arith.constant 0 : index
    %184 = vector.load %arg5[%c0_61, %c0_62] : memref<64x128xf32, #tpu.memory_space<vmem>>, vector<64x128xf32>
    %cst_63 = arith.constant dense<0.000000e+00> : vector<8x128xf32>
    %185 = tpu.matmul %183, %184, %cst_63 {dimension_numbers = #tpu.dot_dimension_numbers<[1], [0], [0], [1], [0, 0, 1, 1], [], []>} : vector<8x64xf32>, vector<64x128xf32>, vector<8x128xf32> -> vector<8x128xf32>
    %c0_64 = arith.constant 0 : index
    %c0_65 = arith.constant 0 : index
    %186 = vector.load %arg6[%c0_64, %c0_65] : memref<1x128xf32, #tpu.memory_space<vmem>>, vector<1x128xf32>
    %187 = vector.broadcast %186 : vector<1x128xf32> to vector<8x128xf32>
    %188 = arith.addf %185, %187 : vector<8x128xf32>
    %c0_66 = arith.constant 0 : index
    %c0_67 = arith.constant 0 : index
    %189 = vector.load %arg7[%c0_66, %c0_67] : memref<8x128xf32, #tpu.memory_space<vmem>>, vector<8x128xf32>
    tpu.vector_store %arg7[%c0_66, %c0_67], %188 {strides = array<i32>} : memref<8x128xf32, #tpu.memory_space<vmem>>, vector<8x128xf32>,
    return
  }
  func.func @transform_0(%arg0: i32) -> (i32, i32, i32) {
    %c0_i32 = arith.constant 0 : i32
    %c0_i32_0 = arith.constant 0 : i32
    %c0_i32_1 = arith.constant 0 : i32
    return %c0_i32, %arg0, %c0_i32_0 : i32, i32, i32
  }
  func.func @transform_1(%arg0: i32) -> (i32, i32) {
    %c0_i32 = arith.constant 0 : i32
    %c0_i32_0 = arith.constant 0 : i32
    %c0_i32_1 = arith.constant 0 : i32
    return %c0_i32, %c0_i32_0 : i32, i32
  }
  func.func @transform_2(%arg0: i32) -> (i32, i32) {
    %c0_i32 = arith.constant 0 : i32
    %c0_i32_0 = arith.constant 0 : i32
    %c0_i32_1 = arith.constant 0 : i32
    return %c0_i32, %c0_i32_0 : i32, i32
  }
  func.func @transform_3(%arg0: i32) -> (i32, i32) {
    %c0_i32 = arith.constant 0 : i32
    %c0_i32_0 = arith.constant 0 : i32
    %c0_i32_1 = arith.constant 0 : i32
    return %c0_i32, %c0_i32_0 : i32, i32
  }
  func.func @transform_4(%arg0: i32) -> (i32, i32) {
    %c0_i32 = arith.constant 0 : i32
    %c0_i32_0 = arith.constant 0 : i32
    %c0_i32_1 = arith.constant 0 : i32
    return %c0_i32, %c0_i32_0 : i32, i32
  }
  func.func @transform_5(%arg0: i32) -> (i32, i32) {
    %c0_i32 = arith.constant 0 : i32
    %c0_i32_0 = arith.constant 0 : i32
    %c0_i32_1 = arith.constant 0 : i32
    return %c0_i32, %c0_i32_0 : i32, i32
  }
  func.func @transform_6(%arg0: i32) -> (i32, i32) {
    %c0_i32 = arith.constant 0 : i32
    %c0_i32_0 = arith.constant 0 : i32
    return %arg0, %c0_i32 : i32, i32
  }
}

</mosaic_0001>

<bundles_post_ra>
// kernel: rnn_forward.1
= control target key start
LH: loop header
LB: loop body
LE: loop exit
PB: predicated region body
PF: predicated region fallthrough
CT: control target
= control target key end

     0   :  { %v800_v3 = vmov 0   ;;  %v801_v18 = vmov 0.0   ;;  %s802_s10 = smov 64   ;;  %vm61_vm0 = vcmask 523264   ;;  %s1188_s3 = inlined_call_operand.vmem [shape: f32[64,256], index: 3, kind: input, shape index: {}]   ;;  %s1189_s0 = inlined_call_operand.vmem [shape: f32[8,8,1], index: 0, kind: input, shape index: {}]   ;;  %s1190_s1 = inlined_call_operand.vmem [shape: f32[1,256], index: 1, kind: input, shape index: {}]   ;;  %s1191_s2 = inlined_call_operand.vmem [shape: f32[1,256], index: 2, kind: input, shape index: {}]   ;;  %s1192_s4 = inlined_call_operand.vmem [shape: f32[64,128], index: 4, kind: input, shape index: {}]   ;;  %s1193_s5 = inlined_call_operand.vmem [shape: f32[1,128], index: 5, kind: input, shape index: {}]   ;;  %s1194_s6 = inlined_call_operand.vmem [shape: f32[8,128], index: 6, kind: output, shape index: {}]  }
   0x1   :  { %v841_v0 = vld [vmem:[%s1188_s3 + $0x70] sm:$0xff]  ;;  %v846_v1 = vld [vmem:[%s1188_s3 + $0x78] sm:$0xff]  ;;  %v851_v2 = vld [vmem:[%s1188_s3 + $0x60] sm:$0xff]  ;;  %748 = vset.pattern.permute.xlu0 %v800_v3  ;;  %749 = vset.pattern.permute.xlu2 %v800_v3 }
   0x2   :  { %73 = vmatpush.msra.mxu0 %v841_v0  ;;  %93 = vmatpush.msra.mxu1 %v846_v1  ;;  %v860_v4 = vld [vmem:[%s1188_s3 + $0x68] sm:$0xff]  ;;  %v865_v5 = vld [vmem:[%s1188_s3 + $0x50] sm:$0xff]  ;;  %v870_v6 = vld [vmem:[%s1188_s3 + $0x58] sm:$0xff] }
   0x3   :  { %152 = vmatpush.msra.mxu2 %v841_v0  ;;  %172 = vmatpush.msra.mxu3 %v846_v1  ;;  %v879_v7 = vld [vmem:[%s1188_s3 + $0x40] sm:$0xff]  ;;  %v884_v8 = vld [vmem:[%s1188_s3 + $0x48] sm:$0xff]  ;;  %v896_v10 = vld [vmem:[%s1188_s3 + $0x30] sm:$0xff] }
   0x4   :  { %74 = vmatpush.msra.mxu0 %v851_v2  ;;  %94 = vmatpush.msra.mxu1 %v860_v4  ;;  %v35_v9 = vld [vmem:[%s1189_s0] sm:$0xff]  ;;  %v901_v11 = vld [vmem:[%s1188_s3 + $0x38] sm:$0xff]  ;;  %v914_v13 = vld [vmem:[%s1188_s3 + $0x28] sm:$0xff] }
   0x5   :  { %153 = vmatpush.msra.mxu2 %v851_v2  ;;  %173 = vmatpush.msra.mxu3 %v860_v4  ;;  %v909_v12 = vld [vmem:[%s1188_s3 + $0x20] sm:$0xff]  ;;  %v923_v14 = vld [vmem:[%s1188_s3 + $0x10] sm:$0xff]  ;;  %v928_v15 = vld [vmem:[%s1188_s3 + $0x18] sm:$0xff] }
   0x6   :  { %75 = vmatpush.msra.mxu0 %v865_v5  ;;  %95 = vmatpush.msra.mxu1 %v870_v6  ;;  %v937_v16 = vld [vmem:[%s1188_s3] sm:$0xff]  ;;  %v942_v17 = vld [vmem:[%s1188_s3 + $0x8] sm:$0xff]  ;;  %v726_v55 = vld [vmem:[%s1189_s0 + $0x10] sm:$0xff] }
   0x7   :  { %38 = vperm.xlu0 %748, %v35_v9   ;;  %154 = vmatpush.msra.mxu2 %v865_v5  ;;  %v23_v19 = vld [vmem:[%s1190_s1] sm:$0x3]  ;;  %v723_v44 = vld [vmem:[%s1189_s0 + $0x8] sm:$0xff] }
   0x8   :  { %76 = vmatpush.msra.mxu0 %v879_v7  ;;  %96 = vmatpush.msra.mxu1 %v884_v8  ;;  %v1007_v20 = vperm.slane %v23_v19, 1  ;;  %v29_v22 = vld [vmem:[%s1191_s2] sm:$0x3]  ;;  %v1017_v29 = vperm.slane %v23_v19, 0 }
   0x9   :  { %174 = vmatpush.msra.mxu3 %v870_v6  ;;  %155 = vmatpush.msra.mxu2 %v879_v7  ;;  %v1013_v24 = vperm.slane %v29_v22, 1  ;;  %v1020_v31 = vperm.slane %v29_v22, 0 }
   0xa   :  { %77 = vmatpush.msra.mxu0 %v896_v10  ;;  %97 = vmatpush.msra.mxu1 %v901_v11 }
   0xb   :  { %175 = vmatpush.msra.mxu3 %v884_v8  ;;  %156 = vmatpush.msra.mxu2 %v896_v10 }
   0xc   :  { %78 = vmatpush.msra.mxu0 %v909_v12  ;;  %98 = vmatpush.msra.mxu1 %v914_v13 }
   0xd   :  { %176 = vmatpush.msra.mxu3 %v901_v11  ;;  %157 = vmatpush.msra.mxu2 %v909_v12 }
   0xe   :  { %79 = vmatpush.msra.mxu0 %v923_v14  ;;  %99 = vmatpush.msra.mxu1 %v928_v15 }
   0xf   :  { %177 = vmatpush.msra.mxu3 %v914_v13  ;;  %158 = vmatpush.msra.mxu2 %v923_v14 }
  0x10   :  { %80 = vmatpush.msra.mxu0 %v937_v16  ;;  %100 = vmatpush.msra.mxu1 %v942_v17 }
  0x11   :  { %81 = vmatmul.f32.vlgmr.msra.gmra.mxu0 %v801_v18  ;;  %101 = vmatmul.f32.vlgmr.msra.gmra.mxu1 %v801_v18 }
  0x12   :  { %178 = vmatpush.msra.mxu3 %v928_v15  ;;  %159 = vmatpush.msra.mxu2 %v937_v16 }
  0x13   :  { %231 = vmatpush.msrb.mxu0 %v841_v0  ;;  %251 = vmatpush.msrb.mxu1 %v846_v1 }
  0x14   :  { %179 = vmatpush.msra.mxu3 %v942_v17  ;;  %310 = vmatpush.msrb.mxu2 %v841_v0 }
  0x15   :  { %232 = vmatpush.msrb.mxu0 %v851_v2  ;;  %252 = vmatpush.msrb.mxu1 %v860_v4 }
  0x16   :  { %330 = vmatpush.msrb.mxu3 %v846_v1  ;;  %311 = vmatpush.msrb.mxu2 %v851_v2 }
  0x17   :  { %233 = vmatpush.msrb.mxu0 %v865_v5  ;;  %253 = vmatpush.msrb.mxu1 %v870_v6 }
  0x18   :  { %331 = vmatpush.msrb.mxu3 %v860_v4  ;;  %312 = vmatpush.msrb.mxu2 %v865_v5 }
  0x19   :  { %234 = vmatpush.msrb.mxu0 %v879_v7  ;;  %254 = vmatpush.msrb.mxu1 %v884_v8 }
  0x1a   :  { %332 = vmatpush.msrb.mxu3 %v870_v6  ;;  %313 = vmatpush.msrb.mxu2 %v879_v7 }
  0x1b   :  { %235 = vmatpush.msrb.mxu0 %v896_v10  ;;  %255 = vmatpush.msrb.mxu1 %v901_v11 }
  0x1c   :  { %333 = vmatpush.msrb.mxu3 %v884_v8  ;;  %314 = vmatpush.msrb.mxu2 %v896_v10 }
  0x1d   :  { %236 = vmatpush.msrb.mxu0 %v909_v12  ;;  %256 = vmatpush.msrb.mxu1 %v914_v13 }
  0x1e   :  { %334 = vmatpush.msrb.mxu3 %v901_v11  ;;  %315 = vmatpush.msrb.mxu2 %v909_v12 }
  0x1f   :  { %237 = vmatpush.msrb.mxu0 %v923_v14  ;;  %257 = vmatpush.msrb.mxu1 %v928_v15 }
  0x20   :  { %335 = vmatpush.msrb.mxu3 %v914_v13  ;;  %316 = vmatpush.msrb.mxu2 %v923_v14 }
  0x21   :  { %238 = vmatpush.msrb.mxu0 %v937_v16  ;;  %258 = vmatpush.msrb.mxu1 %v942_v17 }
  0x22   :  { %336 = vmatpush.msrb.mxu3 %v928_v15  ;;  %317 = vmatpush.msrb.mxu2 %v937_v16 }
  0x23   :  { %389 = vmatpush.msra.mxu0 %v841_v0  ;;  %409 = vmatpush.msra.mxu1 %v846_v1 }
  0x24   :  { %337 = vmatpush.msrb.mxu3 %v942_v17  ;;  %750 = vset.pattern.permute.xlu1 %v800_v3 }
  0x25   :  { %390 = vmatpush.msra.mxu0 %v851_v2  ;;  %410 = vmatpush.msra.mxu1 %v860_v4 }
  0x26   :  { %134 = vperm.xlu2 %749, %v723_v44  }
  0x27   :  { %391 = vmatpush.msra.mxu0 %v865_v5  ;;  %411 = vmatpush.msra.mxu1 %v870_v6 }
  0x29   :  { %392 = vmatpush.msra.mxu0 %v879_v7  ;;  %412 = vmatpush.msra.mxu1 %v884_v8 }
  0x2b   :  { %393 = vmatpush.msra.mxu0 %v896_v10  ;;  %413 = vmatpush.msra.mxu1 %v901_v11 }
  0x2d   :  { %394 = vmatpush.msra.mxu0 %v909_v12  ;;  %414 = vmatpush.msra.mxu1 %v914_v13 }
  0x2f   :  { %395 = vmatpush.msra.mxu0 %v923_v14  ;;  %415 = vmatpush.msra.mxu1 %v928_v15 }
  0x31   :  { %396 = vmatpush.msra.mxu0 %v937_v16  ;;  %416 = vmatpush.msra.mxu1 %v942_v17 }
  0x79   :  { %v39_v21 = vpop.permute.xlu0 %38 }
  0x7a   :  { %v42_v23 = vmul.f32 %v39_v21, %v1007_v20  ;;  %v41_v30 = vmul.f32 %v39_v21, %v1017_v29 }
  0x7c   :  { %v44_v25 = vadd.f32 %v42_v23, %v1013_v24  ;;  %v43_v32 = vadd.f32 %v41_v30, %v1020_v31 }
  0x80   :  { %v135_v49 = vpop.permute.xlu2 %134 }
  0x81   :  { %v138_v50 = vmul.f32 %v135_v49, %v1007_v20  ;;  %v137_v56 = vmul.f32 %v135_v49, %v1017_v29 }
  0x83   :  { %v140_v51 = vadd.f32 %v138_v50, %v1013_v24  ;;  %v139_v57 = vadd.f32 %v137_v56, %v1020_v31  ;;  %v732_v56 = vld [vmem:[%s1189_s0 + $0x20] sm:$0xff] }
  0x8e   :  { %v102_v26 = vpop.f32.mrf.mxu1  ;;  %v82_v33 = vpop.f32.mrf.mxu0 }
  0x8f   :  { %v106_v27 = vadd.f32 %v102_v26, %v44_v25  ;;  %v105_v34 = vadd.f32 %v82_v33, %v43_v32 }
  0x91   :  { %752 = vtanh.f32 %v106_v27 }
  0x92   :  { %754 = vtanh.f32 %v105_v34 }
  0x97   :  { %v753_v28 = vpop.eup %752 }
  0x98   :  { %115 = vrot.lane.b32.xlu0 %v753_v28, %s802_s10  ;;  %v755_v35 = vpop.eup %754  ;;  %v110_v45 = vmul.f32 0.5, %v753_v28 }
  0x99   :  { %v109_v36 = vmul.f32 0.5, %v755_v35  ;;  %v729_v35 = vld [vmem:[%s1189_s0 + $0x18] sm:$0xff] }
  0x9a   :  { %v112_v46 = vadd.f32 0.5, %v110_v45 }
  0x9b   :  { %v111_v37 = vadd.f32 0.5, %v109_v36 }
  0x9d   :  { %v113_v40 = vmul.f32 0.0, %v111_v37 }
 0x10a   :  { %v116_v38 = vpop.permute.xlu0 %115 }
 0x10b   :  { %v118_v39 = vmul.f32 %v116_v38, %v111_v37 }
 0x10d   :  { %120 = vrot.lane.b32.xlu1 %v118_v39, %s802_s10 }
 0x17f   :  { %v121_v41 = vpop.permute.xlu1 %120 }
 0x180   :  { %v123_v42 = vadd.f32 %v121_v41, %v113_v40 }
 0x182   :  { %756 = vtanh.f32 %v123_v42 }
 0x188   :  { %v757_v43 = vpop.eup %756 }
 0x189   :  { %126 = vrot.lane.b32.xlu1 %v757_v43, %s802_s10 }
 0x1fb   :  { %v127_v47 = vpop.permute.xlu1 %126 }
 0x1fc   :  { %v129_v48 = vmul.f32 %v127_v47, %v112_v46 }
 0x1fe   :  { %724 = vmatmul.msk.f32.vlgmr.msra.gmra.mxu2 %vm61_vm0, %v129_v48  ;;  %725 = vmatmul.msk.f32.vlgmr.msra.gmra.mxu3 %vm61_vm0, %v129_v48 }
 0x1ff   :  { %468 = vmatpush.msra.mxu2 %v841_v0  ;;  %488 = vmatpush.msra.mxu3 %v846_v1 }
 0x201   :  { %469 = vmatpush.msra.mxu2 %v851_v2  ;;  %489 = vmatpush.msra.mxu3 %v860_v4 }
 0x203   :  { %470 = vmatpush.msra.mxu2 %v865_v5  ;;  %490 = vmatpush.msra.mxu3 %v870_v6 }
 0x205   :  { %471 = vmatpush.msra.mxu2 %v879_v7  ;;  %491 = vmatpush.msra.mxu3 %v884_v8 }
 0x207   :  { %472 = vmatpush.msra.mxu2 %v896_v10  ;;  %492 = vmatpush.msra.mxu3 %v901_v11 }
 0x209   :  { %473 = vmatpush.msra.mxu2 %v909_v12  ;;  %493 = vmatpush.msra.mxu3 %v914_v13 }
 0x20b   :  { %474 = vmatpush.msra.mxu2 %v923_v14  ;;  %494 = vmatpush.msra.mxu3 %v928_v15 }
 0x20d   :  { %475 = vmatpush.msra.mxu2 %v937_v16  ;;  %495 = vmatpush.msra.mxu3 %v942_v17 }
 0x281   :  { %v181_v52 = vpop.f32.mrf.mxu3  ;;  %v161_v58 = vpop.f32.mrf.mxu2 }
 0x282   :  { %v185_v53 = vadd.f32 %v181_v52, %v140_v51  ;;  %v184_v59 = vadd.f32 %v161_v58, %v139_v57 }
 0x284   :  { %758 = vtanh.f32 %v185_v53 }
 0x285   :  { %760 = vtanh.f32 %v184_v59 }
 0x28a   :  { %v759_v54 = vpop.eup %758 }
 0x28b   :  { %194 = vrot.lane.b32.xlu2 %v759_v54, %s802_s10  ;;  %v761_v60 = vpop.eup %760  ;;  %v189_v22 = vmul.f32 0.5, %v759_v54 }
 0x28c   :  { %v188_v61 = vmul.f32 0.5, %v761_v60 }
 0x28d   :  { %v191_v23 = vadd.f32 0.5, %v189_v22 }
 0x28e   :  { %v190_v62 = vadd.f32 0.5, %v188_v61 }
 0x290   :  { %v192_v9 = vmul.f32 %v190_v62, %v123_v42 }
 0x293   :  { %213 = vperm.xlu2 %749, %v726_v55  }
 0x2e5   :  { %v195_v63 = vpop.permute.xlu2 %194 }
 0x2e6   :  { %v197_v3 = vmul.f32 %v195_v63, %v190_v62 }
 0x2e8   :  { %199 = vrot.lane.b32.xlu0 %v197_v3, %s802_s10 }
 0x2ed   :  { %v214_v27 = vpop.permute.xlu2 %213 }
 0x2ee   :  { %v217_v28 = vmul.f32 %v214_v27, %v1007_v20  ;;  %v216_v36 = vmul.f32 %v214_v27, %v1017_v29 }
 0x2f0   :  { %v219_v30 = vadd.f32 %v217_v28, %v1013_v24  ;;  %v218_v38 = vadd.f32 %v216_v36, %v1020_v31 }
 0x35a   :  { %v200_v18 = vpop.permute.xlu0 %199 }
 0x35b   :  { %v202_v19 = vadd.f32 %v200_v18, %v192_v9 }
 0x35d   :  { %762 = vtanh.f32 %v202_v19 }
 0x363   :  { %v763_v21 = vpop.eup %762 }
 0x364   :  { %205 = vrot.lane.b32.xlu1 %v763_v21, %s802_s10 }
 0x3d6   :  { %v206_v25 = vpop.permute.xlu1 %205 }
 0x3d7   :  { %v208_v26 = vmul.f32 %v206_v25, %v191_v23 }
 0x3d9   :  { %727 = vmatmul.msk.f32.vlgmr.msrb.gmra.mxu0 %vm61_vm0, %v208_v26  ;;  %728 = vmatmul.msk.f32.vlgmr.msrb.gmra.mxu1 %vm61_vm0, %v208_v26 }
 0x3da   :  { %547 = vmatpush.msrb.mxu0 %v841_v0  ;;  %567 = vmatpush.msrb.mxu1 %v846_v1 }
 0x3dc   :  { %548 = vmatpush.msrb.mxu0 %v851_v2  ;;  %568 = vmatpush.msrb.mxu1 %v860_v4 }
 0x3de   :  { %549 = vmatpush.msrb.mxu0 %v865_v5  ;;  %569 = vmatpush.msrb.mxu1 %v870_v6 }
 0x3e0   :  { %550 = vmatpush.msrb.mxu0 %v879_v7  ;;  %570 = vmatpush.msrb.mxu1 %v884_v8 }
 0x3e2   :  { %551 = vmatpush.msrb.mxu0 %v896_v10  ;;  %571 = vmatpush.msrb.mxu1 %v901_v11 }
 0x3e4   :  { %552 = vmatpush.msrb.mxu0 %v909_v12  ;;  %572 = vmatpush.msrb.mxu1 %v914_v13 }
 0x3e6   :  { %553 = vmatpush.msrb.mxu0 %v923_v14  ;;  %573 = vmatpush.msrb.mxu1 %v928_v15 }
 0x3e8   :  { %554 = vmatpush.msrb.mxu0 %v937_v16  ;;  %574 = vmatpush.msrb.mxu1 %v942_v17 }
 0x456   :  { %v260_v32 = vpop.f32.mrf.mxu1  ;;  %v240_v37 = vpop.f32.mrf.mxu0 }
 0x457   :  { %v264_v33 = vadd.f32 %v260_v32, %v219_v30  ;;  %v263_v39 = vadd.f32 %v240_v37, %v218_v38 }
 0x459   :  { %764 = vtanh.f32 %v264_v33 }
 0x45a   :  { %766 = vtanh.f32 %v263_v39 }
 0x45f   :  { %v765_v34 = vpop.eup %764 }
 0x460   :  { %273 = vrot.lane.b32.xlu0 %v765_v34, %s802_s10  ;;  %v767_v40 = vpop.eup %766  ;;  %v268_v49 = vmul.f32 0.5, %v765_v34 }
 0x461   :  { %v267_v41 = vmul.f32 0.5, %v767_v40 }
 0x462   :  { %v270_v50 = vadd.f32 0.5, %v268_v49 }
 0x463   :  { %v269_v42 = vadd.f32 0.5, %v267_v41 }
 0x465   :  { %v271_v45 = vmul.f32 %v269_v42, %v202_v19  ;;  %v735_v19 = vld [vmem:[%s1189_s0 + $0x28] sm:$0xff] }
 0x468   :  { %292 = vperm.xlu0 %748, %v729_v35  }
 0x4d2   :  { %v274_v43 = vpop.permute.xlu0 %273 }
 0x4d3   :  { %v276_v44 = vmul.f32 %v274_v43, %v269_v42 }
 0x4d5   :  { %278 = vrot.lane.b32.xlu1 %v276_v44, %s802_s10 }
 0x547   :  { %v279_v46 = vpop.permute.xlu1 %278 }
 0x548   :  { %v281_v47 = vadd.f32 %v279_v46, %v271_v45 }
 0x54a   :  { %768 = vtanh.f32 %v281_v47 }
 0x550   :  { %v769_v48 = vpop.eup %768 }
 0x551   :  { %284 = vrot.lane.b32.xlu2 %v769_v48, %s802_s10 }
 0x5ab   :  { %v285_v51 = vpop.permute.xlu2 %284 }
 0x5ac   :  { %v287_v52 = vmul.f32 %v285_v51, %v270_v50 }
 0x5ae   :  { %730 = vmatmul.msk.f32.vlgmr.msrb.gmra.mxu2 %vm61_vm0, %v287_v52  ;;  %731 = vmatmul.msk.f32.vlgmr.msrb.gmra.mxu3 %vm61_vm0, %v287_v52 }
 0x5af   :  { %626 = vmatpush.msrb.mxu2 %v841_v0  ;;  %646 = vmatpush.msrb.mxu3 %v846_v1  ;;  %v293_v0 = vpop.permute.xlu0 %292 }
 0x5b0   :  { %v296_v1 = vmul.f32 %v293_v0, %v1007_v20 }
 0x5b1   :  { %627 = vmatpush.msrb.mxu2 %v851_v2  ;;  %647 = vmatpush.msrb.mxu3 %v860_v4 }
 0x5b2   :  { %v298_v2 = vadd.f32 %v296_v1, %v1013_v24 }
 0x5b3   :  { %628 = vmatpush.msrb.mxu2 %v865_v5  ;;  %648 = vmatpush.msrb.mxu3 %v870_v6 }
 0x5b5   :  { %629 = vmatpush.msrb.mxu2 %v879_v7  ;;  %649 = vmatpush.msrb.mxu3 %v884_v8  ;;  %v295_v7 = vmul.f32 %v293_v0, %v1017_v29 }
 0x5b7   :  { %630 = vmatpush.msrb.mxu2 %v896_v10  ;;  %650 = vmatpush.msrb.mxu3 %v901_v11  ;;  %v297_v10 = vadd.f32 %v295_v7, %v1020_v31 }
 0x5b9   :  { %631 = vmatpush.msrb.mxu2 %v909_v12  ;;  %651 = vmatpush.msrb.mxu3 %v914_v13 }
 0x5bb   :  { %632 = vmatpush.msrb.mxu2 %v923_v14  ;;  %652 = vmatpush.msrb.mxu3 %v928_v15 }
 0x5bd   :  { %633 = vmatpush.msrb.mxu2 %v937_v16  ;;  %653 = vmatpush.msrb.mxu3 %v942_v17 }
 0x631   :  { %v339_v4 = vpop.f32.mrf.mxu3  ;;  %v319_v8 = vpop.f32.mrf.mxu2 }
 0x632   :  { %v343_v5 = vadd.f32 %v339_v4, %v298_v2  ;;  %v342_v11 = vadd.f32 %v319_v8, %v297_v10 }
 0x634   :  { %770 = vtanh.f32 %v343_v5 }
 0x635   :  { %772 = vtanh.f32 %v342_v11 }
 0x63a   :  { %v771_v6 = vpop.eup %770 }
 0x63b   :  { %352 = vrot.lane.b32.xlu1 %v771_v6, %s802_s10  ;;  %v773_v12 = vpop.eup %772  ;;  %v347_v57 = vmul.f32 0.5, %v771_v6 }
 0x63c   :  { %v346_v13 = vmul.f32 0.5, %v773_v12 }
 0x63d   :  { %v349_v58 = vadd.f32 0.5, %v347_v57 }
 0x63e   :  { %v348_v14 = vadd.f32 0.5, %v346_v13 }
 0x640   :  { %v350_v17 = vmul.f32 %v348_v14, %v281_v47  ;;  %v738_v47 = vld [vmem:[%s1189_s0 + $0x30] sm:$0xff] }
 0x643   :  { %371 = vperm.xlu1 %750, %v732_v56  }
 0x6ad   :  { %v353_v15 = vpop.permute.xlu1 %352 }
 0x6ae   :  { %v355_v16 = vmul.f32 %v353_v15, %v348_v14 }
 0x6b0   :  { %357 = vrot.lane.b32.xlu2 %v355_v16, %s802_s10 }
 0x6b5   :  { %v372_v61 = vpop.permute.xlu1 %371 }
 0x6b6   :  { %v375_v62 = vmul.f32 %v372_v61, %v1007_v20  ;;  %v374_v21 = vmul.f32 %v372_v61, %v1017_v29 }
 0x6b8   :  { %v377_v63 = vadd.f32 %v375_v62, %v1013_v24  ;;  %v376_v22 = vadd.f32 %v374_v21, %v1020_v31 }
 0x70a   :  { %v358_v53 = vpop.permute.xlu2 %357 }
 0x70b   :  { %v360_v54 = vadd.f32 %v358_v53, %v350_v17 }
 0x70d   :  { %774 = vtanh.f32 %v360_v54 }
 0x713   :  { %v775_v55 = vpop.eup %774 }
 0x714   :  { %363 = vrot.lane.b32.xlu0 %v775_v55, %s802_s10  ;;  %v741_v55 = vld [vmem:[%s1189_s0 + $0x38] sm:$0xff] }
 0x786   :  { %v364_v59 = vpop.permute.xlu0 %363 }
 0x787   :  { %v366_v60 = vmul.f32 %v364_v59, %v349_v58 }
 0x789   :  { %733 = vmatmul.msk.f32.vlgmr.msra.gmra.mxu0 %vm61_vm0, %v366_v60  ;;  %734 = vmatmul.msk.f32.vlgmr.msra.gmra.mxu1 %vm61_vm0, %v366_v60 }
 0x806   :  { %v418_v3 = vpop.f32.mrf.mxu1  ;;  %v398_v23 = vpop.f32.mrf.mxu0 }
 0x807   :  { %v422_v9 = vadd.f32 %v418_v3, %v377_v63  ;;  %v421_v25 = vadd.f32 %v398_v23, %v376_v22 }
 0x809   :  { %776 = vtanh.f32 %v422_v9 }
 0x80a   :  { %778 = vtanh.f32 %v421_v25 }
 0x80f   :  { %v777_v18 = vpop.eup %776 }
 0x810   :  { %431 = vrot.lane.b32.xlu2 %v777_v18, %s802_s10  ;;  %v779_v26 = vpop.eup %778  ;;  %v426_v37 = vmul.f32 0.5, %v777_v18 }
 0x811   :  { %v425_v27 = vmul.f32 0.5, %v779_v26 }
 0x812   :  { %v428_v38 = vadd.f32 0.5, %v426_v37 }
 0x813   :  { %v427_v28 = vadd.f32 0.5, %v425_v27 }
 0x815   :  { %v429_v33 = vmul.f32 %v427_v28, %v360_v54 }
 0x818   :  { %450 = vperm.xlu2 %749, %v735_v19  }
 0x86a   :  { %v432_v30 = vpop.permute.xlu2 %431 }
 0x86b   :  { %v434_v32 = vmul.f32 %v432_v30, %v427_v28 }
 0x86d   :  { %436 = vrot.lane.b32.xlu0 %v434_v32, %s802_s10 }
 0x872   :  { %v451_v41 = vpop.permute.xlu2 %450 }
 0x873   :  { %v454_v42 = vmul.f32 %v451_v41, %v1007_v20  ;;  %v453_v48 = vmul.f32 %v451_v41, %v1017_v29 }
 0x875   :  { %v456_v43 = vadd.f32 %v454_v42, %v1013_v24  ;;  %v455_v50 = vadd.f32 %v453_v48, %v1020_v31 }
 0x8df   :  { %v437_v34 = vpop.permute.xlu0 %436 }
 0x8e0   :  { %v439_v35 = vadd.f32 %v437_v34, %v429_v33 }
 0x8e2   :  { %780 = vtanh.f32 %v439_v35 }
 0x8e8   :  { %v781_v36 = vpop.eup %780 }
 0x8e9   :  { %442 = vrot.lane.b32.xlu1 %v781_v36, %s802_s10 }
 0x95b   :  { %v443_v39 = vpop.permute.xlu1 %442 }
 0x95c   :  { %v445_v40 = vmul.f32 %v443_v39, %v428_v38 }
 0x95e   :  { %736 = vmatmul.msk.f32.vlgmr.msra.gmra.mxu2 %vm61_vm0, %v445_v40  ;;  %737 = vmatmul.msk.f32.vlgmr.msra.gmra.mxu3 %vm61_vm0, %v445_v40 }
 0x9e1   :  { %v497_v44 = vpop.f32.mrf.mxu3  ;;  %v477_v49 = vpop.f32.mrf.mxu2 }
 0x9e2   :  { %v501_v45 = vadd.f32 %v497_v44, %v456_v43  ;;  %v500_v51 = vadd.f32 %v477_v49, %v455_v50  ;;  %v687_v43 = vld [vmem:[%s1192_s4 + $0x20] sm:$0xff]  ;;  %v686_v44 = vld [vmem:[%s1192_s4 + $0x18] sm:$0xff] }
 0x9e4   :  { %782 = vtanh.f32 %v501_v45  ;;  %v685_v45 = vld [vmem:[%s1192_s4 + $0x10] sm:$0xff] }
 0x9e5   :  { %784 = vtanh.f32 %v500_v51  ;;  %v683_v51 = vld [vmem:[%s1192_s4] sm:$0xff] }
 0x9ea   :  { %v783_v46 = vpop.eup %782 }
 0x9eb   :  { %510 = vrot.lane.b32.xlu0 %v783_v46, %s802_s10  ;;  %v785_v52 = vpop.eup %784  ;;  %v505_v10 = vmul.f32 0.5, %v783_v46  ;;  %v684_v46 = vld [vmem:[%s1192_s4 + $0x8] sm:$0xff] }
 0x9ec   :  { %v504_v0 = vmul.f32 0.5, %v785_v52 }
 0x9ed   :  { %v507_v11 = vadd.f32 0.5, %v505_v10 }
 0x9ee   :  { %v506_v1 = vadd.f32 0.5, %v504_v0 }
 0x9f0   :  { %v508_v5 = vmul.f32 %v506_v1, %v439_v35 }
 0x9f3   :  { %529 = vperm.xlu0 %748, %v738_v47  }
 0xa5d   :  { %v511_v2 = vpop.permute.xlu0 %510 }
 0xa5e   :  { %v513_v4 = vmul.f32 %v511_v2, %v506_v1 }
 0xa60   :  { %515 = vrot.lane.b32.xlu1 %v513_v4, %s802_s10  ;;  %v751_v4 = vld [vmem:[%s1193_s5] ss:$0 sm:$0xff] }
 0xa65   :  { %v530_v14 = vpop.permute.xlu0 %529 }
 0xa66   :  { %v533_v15 = vmul.f32 %v530_v14, %v1007_v20  ;;  %v532_v56 = vmul.f32 %v530_v14, %v1017_v29 }
 0xa68   :  { %v535_v16 = vadd.f32 %v533_v15, %v1013_v24  ;;  %v534_v58 = vadd.f32 %v532_v56, %v1020_v31 }
 0xad2   :  { %v516_v6 = vpop.permute.xlu1 %515 }
 0xad3   :  { %v518_v7 = vadd.f32 %v516_v6, %v508_v5 }
 0xad5   :  { %786 = vtanh.f32 %v518_v7 }
 0xadb   :  { %v787_v8 = vpop.eup %786 }
 0xadc   :  { %521 = vrot.lane.b32.xlu2 %v787_v8, %s802_s10 }
 0xb36   :  { %v522_v12 = vpop.permute.xlu2 %521 }
 0xb37   :  { %v524_v13 = vmul.f32 %v522_v12, %v507_v11 }
 0xb39   :  { %739 = vmatmul.msk.f32.vlgmr.msrb.gmra.mxu0 %vm61_vm0, %v524_v13  ;;  %740 = vmatmul.msk.f32.vlgmr.msrb.gmra.mxu1 %vm61_vm0, %v524_v13 }
 0xbb6   :  { %v576_v17 = vpop.f32.mrf.mxu1  ;;  %v556_v57 = vpop.f32.mrf.mxu0 }
 0xbb7   :  { %v580_v53 = vadd.f32 %v576_v17, %v535_v16  ;;  %v579_v59 = vadd.f32 %v556_v57, %v534_v58 }
 0xbb9   :  { %788 = vtanh.f32 %v580_v53 }
 0xbba   :  { %790 = vtanh.f32 %v579_v59 }
 0xbbf   :  { %v789_v54 = vpop.eup %788 }
 0xbc0   :  { %589 = vrot.lane.b32.xlu1 %v789_v54, %s802_s10  ;;  %v791_v60 = vpop.eup %790  ;;  %v584_v22 = vmul.f32 0.5, %v789_v54 }
 0xbc1   :  { %v583_v61 = vmul.f32 0.5, %v791_v60 }
 0xbc2   :  { %v586_v23 = vadd.f32 0.5, %v584_v22 }
 0xbc3   :  { %v585_v62 = vadd.f32 0.5, %v583_v61 }
 0xbc5   :  { %v587_v9 = vmul.f32 %v585_v62, %v518_v7 }
 0xbc8   :  { %608 = vperm.xlu1 %750, %v741_v55  }
 0xc32   :  { %v590_v63 = vpop.permute.xlu1 %589 }
 0xc33   :  { %v592_v3 = vmul.f32 %v590_v63, %v585_v62 }
 0xc35   :  { %594 = vrot.lane.b32.xlu2 %v592_v3, %s802_s10 }
 0xc3a   :  { %v609_v27 = vpop.permute.xlu1 %608 }
 0xc3b   :  { %v612_v28 = vmul.f32 %v609_v27, %v1007_v20  ;;  %v611_v35 = vmul.f32 %v609_v27, %v1017_v29  ;;  %v689_v29 = vld [vmem:[%s1192_s4 + $0x30] sm:$0xff] }
 0xc3d   :  { %v614_v30 = vadd.f32 %v612_v28, %v1013_v24  ;;  %v613_v37 = vadd.f32 %v611_v35, %v1020_v31  ;;  %v690_v24 = vld [vmem:[%s1192_s4 + $0x38] sm:$0xff]  ;;  %v688_v31 = vld [vmem:[%s1192_s4 + $0x28] sm:$0xff] }
 0xc3e   :  { %706 = vmatpush.msra.mxu0 %v690_v24 }
 0xc40   :  { %707 = vmatpush.msra.mxu0 %v689_v29 }
 0xc42   :  { %708 = vmatpush.msra.mxu0 %v688_v31 }
 0xc44   :  { %709 = vmatpush.msra.mxu0 %v687_v43 }
 0xc46   :  { %710 = vmatpush.msra.mxu0 %v686_v44 }
 0xc48   :  { %711 = vmatpush.msra.mxu0 %v685_v45 }
 0xc4a   :  { %712 = vmatpush.msra.mxu0 %v684_v46 }
 0xc4c   :  { %713 = vmatpush.msra.mxu0 %v683_v51 }
 0xc8f   :  { %v595_v18 = vpop.permute.xlu2 %594 }
 0xc90   :  { %v597_v19 = vadd.f32 %v595_v18, %v587_v9 }
 0xc92   :  { %792 = vtanh.f32 %v597_v19 }
 0xc98   :  { %v793_v21 = vpop.eup %792 }
 0xc99   :  { %600 = vrot.lane.b32.xlu0 %v793_v21, %s802_s10 }
 0xd0b   :  { %v601_v25 = vpop.permute.xlu0 %600 }
 0xd0c   :  { %v603_v26 = vmul.f32 %v601_v25, %v586_v23 }
 0xd0e   :  { %742 = vmatmul.msk.f32.vlgmr.msrb.gmra.mxu2 %vm61_vm0, %v603_v26  ;;  %743 = vmatmul.msk.f32.vlgmr.msrb.gmra.mxu3 %vm61_vm0, %v603_v26 }
 0xd91   :  { %v655_v32 = vpop.f32.mrf.mxu3  ;;  %v635_v36 = vpop.f32.mrf.mxu2 }
 0xd92   :  { %v659_v33 = vadd.f32 %v655_v32, %v614_v30  ;;  %v658_v38 = vadd.f32 %v635_v36, %v613_v37 }
 0xd94   :  { %794 = vtanh.f32 %v659_v33 }
 0xd95   :  { %796 = vtanh.f32 %v658_v38 }
 0xd9a   :  { %v795_v34 = vpop.eup %794 }
 0xd9b   :  { %668 = vrot.lane.b32.xlu2 %v795_v34, %s802_s10  ;;  %v797_v39 = vpop.eup %796  ;;  %v663_v52 = vmul.f32 0.5, %v795_v34 }
 0xd9c   :  { %v662_v40 = vmul.f32 0.5, %v797_v39 }
 0xd9d   :  { %v665_v0 = vadd.f32 0.5, %v663_v52 }
 0xd9e   :  { %v664_v41 = vadd.f32 0.5, %v662_v40 }
 0xda0   :  { %v666_v47 = vmul.f32 %v664_v41, %v597_v19 }
 0xdf5   :  { %v669_v42 = vpop.permute.xlu2 %668 }
 0xdf6   :  { %v671_v20 = vmul.f32 %v669_v42, %v664_v41 }
 0xdf8   :  { %673 = vrot.lane.b32.xlu0 %v671_v20, %s802_s10 }
 0xe6a   :  { %v674_v48 = vpop.permute.xlu0 %673 }
 0xe6b   :  { %v676_v49 = vadd.f32 %v674_v48, %v666_v47 }
 0xe6d   :  { %798 = vtanh.f32 %v676_v49 }
 0xe73   :  { %v799_v50 = vpop.eup %798 }
 0xe74   :  { %679 = vrot.lane.b32.xlu1 %v799_v50, %s802_s10 }
 0xee6   :  { %v680_v1 = vpop.permute.xlu1 %679 }
 0xee7   :  { %v682_v2 = vmul.f32 %v680_v1, %v665_v0 }
 0xee9   :  { %744 = vmatmul.msk.f32.vlgmr.msra.gmra.mxu0 %vm61_vm0, %v682_v2 }
 0xf66   :  { %v715_v5 = vpop.f32.mrf.mxu0 }
 0xf67   :  { %v716_v6 = vadd.f32 %v751_v4, %v715_v5 }
 0xf69   :  { %718 = vst [vmem:[%s1194_s6] sm:$0xff] %v716_v6 }

</bundles_post_ra>
